<compile_context>
chip_gen: v7x
topology: tpu7x:2x2x1
jax: 0.10.0
libtpu: 0.0.40
codegen_flags: <defaults>
</compile_context>

<pallas_src>
import functools

import jax
import jax.numpy as jnp
from jax.experimental import pallas as pl
from jax.experimental.pallas import tpu as pltpu

EPS = 1e-3
_VMEM_LIMIT = 32 * 1024 * 1024
# Per-channel-block budget for the single-kernel path: in + out, double
# buffered, f32 -> ~16 bytes per element.
_SMALL_PATH_BYTES = 8 * 1024 * 1024


def _pick_channel_block(c, target=64):
    for cb in range(min(target, c), 0, -1):
        if c % cb == 0 and (cb % 8 == 0 or cb == c):
            return cb
    return c


# --------------------------------------------------------------------------
# Small path: one kernel, grid over channel blocks only ("parallel").
# --------------------------------------------------------------------------
def _bn_fused_kernel(x_ref, p_ref, o_ref, *, inv_n):
    # x_ref: (CB, S) f32; p_ref: (CB, 2) = [gamma | beta].
    x = x_ref[...]
    s = jnp.sum(x, axis=1, keepdims=True)            # (CB, 1) lane reduce (XLU)
    ss = jnp.sum(x * x, axis=1, keepdims=True)       # (CB, 1)
    mean = s * inv_n
    var = jnp.maximum(ss * inv_n - mean * mean, 0.0)  # clamp one-pass variance
    inv_std = jax.lax.rsqrt(var + EPS)                # EUP
    scale = p_ref[:, 0:1] * inv_std                   # (CB, 1)
    shift = p_ref[:, 1:2] - mean * scale              # (CB, 1)
    # Re-read x from VMEM for the store phase: do not keep ~CB*S/1024 vregs
    # live across the reductions above (vld is cheap, spills are not).
    o_ref[...] = x_ref[...] * scale + shift


def _bn_single_pass(x2d, params, cb):
    C, S = x2d.shape
    kernel = functools.partial(_bn_fused_kernel, inv_n=1.0 / float(S))
    return pl.pallas_call(
        kernel,
        out_shape=jax.ShapeDtypeStruct((C, S), x2d.dtype),
        grid_spec=pltpu.PrefetchScalarGridSpec(
            num_scalar_prefetch=0,
            grid=(C // cb,),
            in_specs=[
                pl.BlockSpec((cb, S), lambda i: (i, 0)),
                pl.BlockSpec((cb, 2), lambda i: (i, 0)),
            ],
            out_specs=pl.BlockSpec((cb, S), lambda i: (i, 0)),
        ),
        compiler_params=pltpu.CompilerParams(
            dimension_semantics=("parallel",),
            vmem_limit_bytes=_VMEM_LIMIT,
        ),
    )(x2d, params)


# --------------------------------------------------------------------------
# Large path: gridded stats accumulation, then gridded normalize.
# --------------------------------------------------------------------------
def _bn_stats_kernel(x_ref, stats_ref):
    j = pl.program_id(1)

    @pl.when(j == 0)
    def _():
        stats_ref[...] = jnp.zeros_like(stats_ref)

    x = x_ref[...]                                    # (CB, SB)
    stats_ref[:, 0:1] += jnp.sum(x, axis=1, keepdims=True)
    stats_ref[:, 1:2] += jnp.sum(x * x, axis=1, keepdims=True)


def _bn_apply_kernel(x_ref, ss_ref, o_ref):
    # ss_ref: (CB, 2) = [scale | shift], hoisted per channel block.
    o_ref[...] = x_ref[...] * ss_ref[:, 0:1] + ss_ref[:, 1:2]


def _bn_two_pass(x2d, gamma, beta, cb, n_valid, sb=2048):
    C, S = x2d.shape
    s_pad = pl.cdiv(S, sb) * sb
    if s_pad != S:
        # Zero padding is inert in both sum and sum-of-squares; divide by the
        # true element count below.
        x2d = jnp.pad(x2d, ((0, 0), (0, s_pad - S)))

    stats = pl.pallas_call(
        _bn_stats_kernel,
        out_shape=jax.ShapeDtypeStruct((C, 2), jnp.float32),
        grid_spec=pltpu.PrefetchScalarGridSpec(
            num_scalar_prefetch=0,
            grid=(C // cb, s_pad // sb),
            in_specs=[pl.BlockSpec((cb, sb), lambda i, j: (i, j))],
            out_specs=pl.BlockSpec((cb, 2), lambda i, j: (i, 0)),
        ),
        compiler_params=pltpu.CompilerParams(
            dimension_semantics=("parallel", "arbitrary"),
            vmem_limit_bytes=_VMEM_LIMIT,
        ),
    )(x2d)

    inv_n = 1.0 / float(n_valid)
    mean = stats[:, 0] * inv_n
    var = jnp.maximum(stats[:, 1] * inv_n - mean * mean, 0.0)
    scale = gamma * jax.lax.rsqrt(var + EPS)
    shift = beta - mean * scale
    scale_shift = jnp.stack([scale, shift], axis=1)   # (C, 2)

    out = pl.pallas_call(
        _bn_apply_kernel,
        out_shape=jax.ShapeDtypeStruct((C, s_pad), x2d.dtype),
        grid_spec=pltpu.PrefetchScalarGridSpec(
            num_scalar_prefetch=0,
            grid=(C // cb, s_pad // sb),
            in_specs=[
                pl.BlockSpec((cb, sb), lambda i, j: (i, j)),
                pl.BlockSpec((cb, 2), lambda i, j: (i, 0)),
            ],
            out_specs=pl.BlockSpec((cb, sb), lambda i, j: (i, j)),
        ),
        compiler_params=pltpu.CompilerParams(
            dimension_semantics=("parallel", "parallel"),
            vmem_limit_bytes=_VMEM_LIMIT,
        ),
    )(x2d, scale_shift)

    return out[:, :S] if s_pad != S else out


# --------------------------------------------------------------------------
# Wrapper
# --------------------------------------------------------------------------
def batchnorm2d_pallas(x_nchw, gamma, beta, *, force_two_pass=False):
    """x_nchw: (N, C, H, W) f32; gamma, beta: (C,) f32. Returns (N, C, H, W)."""
    N, C, H, W = x_nchw.shape
    S = N * H * W
    cb = _pick_channel_block(C)

    # (C, N*H*W): channels on sublanes, spatial on lanes. Free reshape for the
    # module's N == 1 shape; an explicit (paid) transpose otherwise.
    if N == 1:
        x2d = x_nchw.reshape(C, S)
    else:
        x2d = jnp.transpose(x_nchw.reshape(N, C, H * W), (1, 0, 2)).reshape(C, S)

    block_bytes = 16 * cb * S  # in + out, double-buffered, f32
    if force_two_pass or block_bytes > _SMALL_PATH_BYTES:
        out2d = _bn_two_pass(
            x2d, gamma.astype(jnp.float32), beta.astype(jnp.float32), cb, S
        )
    else:
        params = jnp.stack([gamma, beta], axis=1).astype(x2d.dtype)  # (C, 2)
        out2d = _bn_single_pass(x2d, params, cb)

    if N == 1:
        return out2d.reshape(N, C, H, W)
    return jnp.transpose(out2d.reshape(C, N, H * W), (1, 0, 2)).reshape(N, C, H, W)


def batchnorm2d_ref(x, gamma, beta):
    mean = jnp.mean(x, axis=(0, 2, 3), keepdims=True)
    var = jnp.mean((x - mean) ** 2, axis=(0, 2, 3), keepdims=True)
    g = gamma.reshape(1, -1, 1, 1)
    b = beta.reshape(1, -1, 1, 1)
    return (x - mean) * jax.lax.rsqrt(var + EPS) * g + b


if __name__ == "__main__":
    key = jax.random.PRNGKey(0)
    kx, kg, kb, kx2 = jax.random.split(key, 4)

    # Shape implied by the module: x224 = randn(1, 192, 14, 14).
    N, C, H, W = 1, 192, 14, 14
    x = jax.random.normal(kx, (N, C, H, W), dtype=jnp.float32)
    # PyTorch default init is gamma=1, beta=0; perturb so the affine path is
    # exercised.
    gamma = 1.0 + 0.1 * jax.random.normal(kg, (C,), dtype=jnp.float32)
    beta = 0.1 * jax.random.normal(kb, (C,), dtype=jnp.float32)

    out = jax.block_until_ready(batchnorm2d_pallas(x, gamma, beta))
    ref = batchnorm2d_ref(x, gamma, beta)
    assert out.shape == (N, C, H, W)
    assert jnp.max(jnp.abs(out - ref)) < 1e-4

    # Exercise the gridded two-pass fallback (large-shape / v7x path) at a
    # modest size so it stays validated.
    x2 = jax.random.normal(kx2, (2, 64, 32, 32), dtype=jnp.float32)
    g2, b2 = gamma[:64], beta[:64]
    out2 = jax.block_until_ready(
        batchnorm2d_pallas(x2, g2, b2, force_two_pass=True)
    )
    ref2 = batchnorm2d_ref(x2, g2, b2)
    assert jnp.max(jnp.abs(out2 - ref2)) < 1e-4

    print("KERNEL_OK")
</pallas_src>

<mosaic_0001>
module attributes {stable_mosaic.version = 11 : i64} {
  func.func @_bn_fused_kernel(%arg0: i32, %arg1: memref<64x196xf32, #tpu.memory_space<vmem>>, %arg2: memref<64x2xf32, #tpu.memory_space<vmem>>, %arg3: memref<64x196xf32, #tpu.memory_space<vmem>>) attributes {dimension_semantics = [#tpu.dimension_semantics<parallel>], iteration_bounds = array<i64: 3>, scalar_prefetch = 0 : i64, scratch_operands = 0 : i64, tpu.core_type = #tpu.core_type<tc>, window_params = [{transform_indices = @transform_0, window_bounds = array<i64: 64, 196>}, {transform_indices = @transform_1, window_bounds = array<i64: 64, 2>}, {transform_indices = @transform_2, window_bounds = array<i64: 64, 196>}]} {
    %c0 = arith.constant 0 : index
    %c0_0 = arith.constant 0 : index
    %0 = vector.load %arg1[%c0, %c0_0] : memref<64x196xf32, #tpu.memory_space<vmem>>, vector<64x196xf32>
    %cst = arith.constant dense<0.000000e+00> : vector<64xf32>
    %1 = vector.multi_reduction <add>, %0, %cst [1] : vector<64x196xf32> to vector<64xf32>
    %2 = vector.shape_cast %1 : vector<64xf32> to vector<64x1xf32>
    %3 = arith.mulf %0, %0 : vector<64x196xf32>
    %cst_1 = arith.constant dense<0.000000e+00> : vector<64xf32>
    %4 = vector.multi_reduction <add>, %3, %cst_1 [1] : vector<64x196xf32> to vector<64xf32>
    %5 = vector.shape_cast %4 : vector<64xf32> to vector<64x1xf32>
    %cst_2 = arith.constant 0.00510204071 : f32
    %6 = vector.broadcast %cst_2 : f32 to vector<64x1xf32>
    %7 = arith.mulf %2, %6 : vector<64x1xf32>
    %cst_3 = arith.constant 0.00510204071 : f32
    %8 = vector.broadcast %cst_3 : f32 to vector<64x1xf32>
    %9 = arith.mulf %5, %8 : vector<64x1xf32>
    %10 = arith.mulf %7, %7 : vector<64x1xf32>
    %11 = arith.subf %9, %10 : vector<64x1xf32>
    %cst_4 = arith.constant 0.000000e+00 : f32
    %12 = vector.broadcast %cst_4 : f32 to vector<64x1xf32>
    %13 = arith.maximumf %11, %12 : vector<64x1xf32>
    %cst_5 = arith.constant 1.000000e-03 : f32
    %14 = vector.broadcast %cst_5 : f32 to vector<64x1xf32>
    %15 = arith.addf %13, %14 : vector<64x1xf32>
    %16 = math.rsqrt %15 : vector<64x1xf32>
    %c0_6 = arith.constant 0 : index
    %c0_7 = arith.constant 0 : index
    %17 = vector.load %arg2[%c0_6, %c0_7] : memref<64x2xf32, #tpu.memory_space<vmem>>, vector<64x1xf32>
    %18 = arith.mulf %17, %16 : vector<64x1xf32>
    %c0_8 = arith.constant 0 : index
    %c1 = arith.constant 1 : index
    %19 = vector.load %arg2[%c0_8, %c1] : memref<64x2xf32, #tpu.memory_space<vmem>>, vector<64x1xf32>
    %20 = arith.mulf %7, %18 : vector<64x1xf32>
    %21 = arith.subf %19, %20 : vector<64x1xf32>
    %c0_9 = arith.constant 0 : index
    %c0_10 = arith.constant 0 : index
    %22 = vector.load %arg1[%c0_9, %c0_10] : memref<64x196xf32, #tpu.memory_space<vmem>>, vector<64x196xf32>
    %23 = vector.broadcast %18 : vector<64x1xf32> to vector<64x196xf32>
    %24 = arith.mulf %22, %23 : vector<64x196xf32>
    %25 = vector.broadcast %21 : vector<64x1xf32> to vector<64x196xf32>
    %26 = arith.addf %24, %25 : vector<64x196xf32>
    %c0_11 = arith.constant 0 : index
    %c0_12 = arith.constant 0 : index
    %27 = vector.load %arg3[%c0_11, %c0_12] : memref<64x196xf32, #tpu.memory_space<vmem>>, vector<64x196xf32>
    tpu.vector_store %arg3[%c0_11, %c0_12], %26 {strides = array<i32>} : memref<64x196xf32, #tpu.memory_space<vmem>>, vector<64x196xf32>,
    return
  }
  func.func @transform_0(%arg0: i32) -> (i32, i32) {
    %c0_i32 = arith.constant 0 : i32
    %c0_i32_0 = arith.constant 0 : i32
    return %arg0, %c0_i32 : i32, i32
  }
  func.func @transform_1(%arg0: i32) -> (i32, i32) {
    %c0_i32 = arith.constant 0 : i32
    %c0_i32_0 = arith.constant 0 : i32
    return %arg0, %c0_i32 : i32, i32
  }
  func.func @transform_2(%arg0: i32) -> (i32, i32) {
    %c0_i32 = arith.constant 0 : i32
    %c0_i32_0 = arith.constant 0 : i32
    return %arg0, %c0_i32 : i32, i32
  }
}

</mosaic_0001>

<bundles_post_ra>
// kernel: tpu_custom_call.1
= control target key start
LH: loop header
LB: loop body
LE: loop exit
PB: predicated region body
PF: predicated region fallthrough
CT: control target
= control target key end

     0   :  { %7 = vsyncpa [#allocation3], 0  ;;  %s1233_s0 = inlined_call_operand.hbm [shape: f32[192,196], index: 0, kind: input, shape index: {}]   ;;  %s1234_s1 = inlined_call_operand.vmem [shape: f32[192,2], index: 1, kind: input, shape index: {}]   ;;  %s1235_s2 = inlined_call_operand.hbm [shape: f32[192,196], index: 2, kind: output, shape index: {}]  }
   0x1   :  { %9 = vsyncpa [#allocation3 + $0x1], 0 }
   0x2   :  { %10 = vsyncpa [#allocation4], 0 }
   0x3   :  { %12 = vsyncpa [#allocation4 + $0x1], 0  ;;  %s849_s9 = smov 0   ;;  %s851_s10 = smov 0  }
   0x4   :  { %s853_s11 = smov 0   ;;  %s855_s12 = smov 0  }
   0x5 LB: > { %s870_s13 = sadd.s32 4294967295, %s823_s12   ;;  %s632_s14 = sadd.s32 4294967294, %s823_s12   ;;  %s823_s12 = sphi %s855_s12, %s1248_s12   ;;  %s819_s11 = sphi %s853_s11, %s1247_s11   ;;  %s815_s10 = sphi %s851_s10, %s1246_s10   ;;  %s811_s9 = sphi %s849_s9, %s1245_s9  }
   0x6   : > { %s874_s15 = sadd.s32 1, %s823_s12   ;;  %s25_s16 = sadd.s32 1, %s819_s11 }
   0x7   : > { %s22_s17 = ssub.s32 %s823_s12, %s874_s15  ;;  %p32_p0 = scmp.ne.s32.totalorder %s819_s11, %s815_s10 }
   0x8   : > { %p23_p1 = scmp.eq.s32.totalorder %s22_s17, 0  ;;  %p33_p2 = scmp.eq.s32.totalorder %s823_s12, 0 }
   0x9   : > { %p38_p3 = scmp.ne.s32.totalorder %s815_s10, %s811_s9  ;;  %p39_p4 = scmp.eq.s32.totalorder %s870_s13, 0 }
   0xa   : > { %s886_s18 = scalar_select %p23_p1, %s819_s11, %s25_s16  }
   0xb   : > { %p888_p5 = por %p33_p2, %p32_p0  ;;  %p892_p6 = por %p39_p4, %p38_p3 }
   0xc   : > { %p88_p7 = scmp.eq.s32.totalorder %s870_s13, 2  ;;  %p94_p8 = scmp.eq.s32.totalorder %s632_s14, 2 }
   0xd   : > { %p666_p9 = scmp.lt.s32.totalorder %s823_s12, 3  ;;  %s114_s23 = sand.u32 1, %s819_s11  }
   0xe   : > { %p898_p10 = por %p88_p7, %p32_p0  ;;  %p902_p11 = por %p94_p8, %p38_p3 }
   0xf   : > { %s651_s24 = sshll.u32 %s823_s12, 11  ;;  %s635_s25 = sshll.u32 %s114_s23, 7 }
  0x10   : > { %s1239_s21 = scalar_select %p898_p10, 1, 0 }
  0x11   : > { %s1240_s22 = scalar_select %p902_p11, 1, 0 }
  0x12   : > { %s911_s28 = scalar_lea.hbm %s1233_s0, %s651_s24  ;;  %s118_s29 = scalar_lea.vmem [#allocation2], %s635_s25 }
  0x13   : > { %s126_s30 = sshll.u32 %s118_s29, 4  ;;  %p915_p12 = pnand %p666_p9, %p888_p5  ;;  %s919_s30 = int_to_ptr.vmem [resolvable:$true] %s126_s30 }
  0x14   : > { %s921_s4 = scalar_lea.sflag [#allocation3], %s114_s23  ;;  %s727_s5 = scalar_lea.hbm %s911_s28, 2048 }
  0x15   : > { %p728_p13 = scmp.ne.s32.totalorder %s911_s28, %s727_s5  ;;  %p729_p0 = pneg %p915_p12 }
  0x16   : > { %s732_s8 = scalar_lea.hbm %s1233_s0, 6144  ;;  %p733_p3 = scmp.lt.u32.totalorder %s911_s28, %s1233_s0 }
  0x17   : > { %p730_p1 = pnand %p729_p0, %p728_p13  ;;  %p734_p4 = scmp.lt.u32.totalorder %s732_s8, %s727_s5 }
  0x18   : > { %p736_p7 = scmp.lt.u32.totalorder %s727_s5, %s911_s28 }
  0x19   : > { %p731_p2 = pneg %p730_p1  ;;  %p735_p5 = por %p734_p4, %p733_p3 }
  0x1b   : > { %p737_p8 = por %p736_p7, %p735_p5 }
  0x1d   : > { %p738_p9 = pnand %p737_p8, %p731_p2 }
  0x1f   : > { %741 = shalt.err (!%p738_p9)
}
  0x20   : > { %s742_s17 = scalar_lea.vmem %s919_s30, 2048  ;;  %s825_s19 = smov [#allocation2]  }
  0x21   : > { %p743_p13 = scmp.ne.s32.totalorder %s919_s30, %s742_s17  ;;  %s747_s23 = sshll.u32 %s825_s19, 4  ;;  %s748_s23 = int_to_ptr.vmem [resolvable:$false] %s747_s23 }
  0x22   : > { %s749_s24 = scalar_lea.vmem %s748_s23, 4096  ;;  %p750_p10 = scmp.lt.s32.totalorder %s919_s30, %s748_s23 }
  0x23   : > { %p745_p1 = pnand %p743_p13, %p729_p0  ;;  %p751_p3 = scmp.lt.s32.totalorder %s749_s24, %s742_s17 }
  0x25   : > { %p746_p11 = pneg %p745_p1  ;;  %p752_p4 = por %p751_p3, %p750_p10 }
  0x27   : > { %p753_p5 = pnand %p752_p4, %p746_p11 }
  0x29   : > { %756 = shalt.err (!%p753_p5)
}
  0x2a   : > { %s826_s25 = smov 256   ;;  %s827_s26 = smov 16  }
  0x2b   : > { %661 = dma.hbm_to_vmem [thread:$0]  (!%p915_p12), %s911_s28, 2048, %s919_s30, %s921_s4, %s826_s25, %s826_s25, %s827_s26  }
  0x2c   : > { %p639_p0 = scmp.ge.s32.totalorder %s823_s12, 1  ;;  %p143_p2 = scmp.lt.s32.totalorder %s823_s12, 4 }
  0x2e   : > { %p144_p7 = pnand %p639_p0, %p143_p2 }
  0x2f   : > { %s952_s27 = sand.u32 (!%p144_p7), 1, %s815_s10  }
  0x30   : > { %147 = sbr.rel (%p144_p7) target bundleno = 520 (0x208), region = 28  ;;  %s640_s29 = sshll.u32 (!%p144_p7), %s952_s27, 7 }
  0x31   : > { %s150_s5 = scalar_lea.sflag (!%p144_p7), [#allocation3], %s952_s27  ;;  %s958_s6 = scalar_lea.vmem (!%p144_p7), [#allocation2], %s640_s29 }
  0x37   : > { %802 = dma.done.wait (%p892_p6), %s150_s5, 2048  }
  0x38   : > { %804 = vsyncadd (%p892_p6), %s150_s5, 4294965248  ;;  %vm203_vm0 = vcmask 556032   ;;  %v965_v0 = vld [vmem:[%s958_s6 + $0x20] sm:$0xff]  ;;  %v968_v1 = vld [vmem:[%s958_s6 + $0x28] sm:$0xff]  ;;  %s642_s20 = sshll.u32 %s870_s13, 3  ;;  %s829_s8 = smov 1  }
  0x39   : > { %v971_v2 = vld [vmem:[%s958_s6] sm:$0xff]  ;;  %v212_v3 = vsel %vm203_vm0, %v968_v1, 0.0  ;;  %v976_v4 = vld [vmem:[%s958_s6 + $0x8] sm:$0xff]  ;;  %v979_v5 = vld [vmem:[%s958_s6 + $0x30] sm:$0xff]  ;;  %v241_v39 = vmul.f32 %v968_v1, %v968_v1  ;;  %v240_v44 = vmul.f32 %v965_v0, %v965_v0  ;;  %p1089_p6 = scmp.lt.s32.totalorder %s642_s20, 23  ;;  %s1145_s14 = scalar_lea.vmem [#allocation5], %s640_s29 }
  0x3a   : > { %v982_v6 = vld [vmem:[%s958_s6 + $0x38] sm:$0xff]  ;;  %v213_v7 = vadd.f32 %v212_v3, %v965_v0  ;;  %v204_v8 = vsel %vm203_vm0, %v976_v4, 0.0  ;;  %v990_v10 = vld [vmem:[%s958_s6 + $0x10] sm:$0xff]  ;;  %v1002_v15 = vld [vmem:[%s958_s6 + $0x48] sm:$0xff]  ;;  %v237_v31 = vmul.f32 %v976_v4, %v976_v4  ;;  %v236_v36 = vmul.f32 %v971_v2, %v971_v2  ;;  %s653_s16 = sshll.u32 %s870_s13, 11  ;;  %s547_s17 = sshll.u32 %s1145_s14, 4  ;;  %s1187_s17 = int_to_ptr.vmem [resolvable:$true] %s547_s17 }
  0x3b   : > { %v216_v9 = vsel %vm203_vm0, %v982_v6, 0.0  ;;  %v993_v11 = vld [vmem:[%s958_s6 + $0x18] sm:$0xff]  ;;  %v205_v12 = vadd.f32 %v204_v8, %v971_v2  ;;  %v1007_v18 = vld [vmem:[%s958_s6 + $0x50] sm:$0xff]  ;;  %v1012_v20 = vld [vmem:[%s958_s6 + $0x40] sm:$0xff]  ;;  %v220_v21 = vsel %vm203_vm0, %v1002_v15, 0.0  ;;  %v238_v33 = vmul.f32 %v990_v10, %v990_v10  ;;  %s1250_s20 = smov (!%p1089_p6, %s642_s20), 23  ;;  %s1185_s24 = scalar_lea.hbm %s1235_s2, %s653_s16 }
  0x3c   : > { %v208_v13 = vsel %vm203_vm0, %v993_v11, 0.0  ;;  %v999_v14 = vld [vmem:[%s958_s6 + $0x58] sm:$0xff]  ;;  %214 = vadd.xlane.f32.xlu1 %v213_v7  ;;  %v217_v16 = vadd.f32 %v216_v9, %v979_v5  ;;  %v1020_v23 = vld [vmem:[%s958_s6 + $0x68] sm:$0xff]  ;;  %v221_v25 = vadd.f32 %v220_v21, %v1012_v20  ;;  %v1025_v26 = vld [vmem:[%s958_s6 + $0x70] sm:$0xff]  ;;  %v239_v28 = vmul.f32 %v993_v11, %v993_v11  ;;  %s643_s30 = sshll.u32 %s1250_s20, 3  ;;  %s533_s13 = scalar_lea.sflag [#allocation4], %s952_s27 }
  0x3d   : > { %206 = vadd.xlane.f32.xlu0 %v205_v12  ;;  %v209_v17 = vadd.f32 %v208_v13, %v990_v10  ;;  %v224_v19 = vsel %vm203_vm0, %v999_v14, 0.0  ;;  %v1017_v22 = vld [vmem:[%s958_s6 + $0x78] sm:$0xff]  ;;  %v1032_v29 = vld [vmem:[%s958_s6 + $0x60] sm:$0xff]  ;;  %v228_v30 = vsel %vm203_vm0, %v1020_v23, 0.0  ;;  %v243_v37 = vmul.f32 %v982_v6, %v982_v6  ;;  %s1121_s7 = scalar_lea.vmem %s1234_s1, %s643_s30  ;;  %s757_s25 = scalar_lea.vmem %s1187_s17, 2048 }
  0x3e   : > { %v225_v24 = vadd.f32 %v224_v19, %v1007_v18  ;;  %v232_v27 = vsel %vm203_vm0, %v1017_v22, 0.0  ;;  %v229_v34 = vadd.f32 %v228_v30, %v1032_v29  ;;  %v256_v35 = vsel %vm203_vm0, %v239_v28, 0.0  ;;  %p758_p10 = scmp.ne.s32.totalorder %s1187_s17, %s757_s25  ;;  %p1243_p11 = scmp.ne.s32.totalorder %s1239_s21, 0 }
  0x3f   : > { %v233_v32 = vadd.f32 %v232_v27, %v1025_v26  ;;  %v252_v38 = vsel %vm203_vm0, %v237_v31, 0.0  ;;  %v257_v40 = vadd.f32 %v256_v35, %v238_v33  ;;  %v242_v41 = vmul.f32 %v979_v5, %v979_v5  ;;  %s831_s26 = smov [#allocation5]  }
  0x40   : > { %218 = vadd.xlane.f32.xlu1 %v217_v16  ;;  %v253_v42 = vadd.f32 %v252_v38, %v236_v36  ;;  %v264_v43 = vsel %vm203_vm0, %v243_v37, 0.0  ;;  %v247_v45 = vmul.f32 %v999_v14, %v999_v14  ;;  %v260_v46 = vsel %vm203_vm0, %v241_v39, 0.0  ;;  %p759_p12 = pnand %p758_p10, %p1243_p11  ;;  %s761_s29 = sshll.u32 %s831_s26, 4  ;;  %s762_s29 = int_to_ptr.vmem [resolvable:$false] %s761_s29 }
  0x41   : > { %210 = vadd.xlane.f32.xlu0 %v209_v17  ;;  %v245_v47 = vmul.f32 %v1002_v15, %v1002_v15  ;;  %v265_v48 = vadd.f32 %v264_v43, %v242_v41  ;;  %v246_v49 = vmul.f32 %v1007_v18, %v1007_v18  ;;  %v261_v50 = vadd.f32 %v260_v46, %v240_v44  ;;  %s763_s5 = scalar_lea.vmem %s762_s29, 4096  ;;  %p764_p9 = scmp.lt.s32.totalorder %s1187_s17, %s762_s29 }
  0x42   : > { %v272_v51 = vsel %vm203_vm0, %v247_v45, 0.0  ;;  %v244_v52 = vmul.f32 %v1012_v20, %v1012_v20  ;;  %v251_v53 = vmul.f32 %v1017_v22, %v1017_v22  ;;  %v249_v55 = vmul.f32 %v1020_v23, %v1020_v23  ;;  %p760_p8 = pneg %p759_p12  ;;  %p765_p13 = scmp.lt.s32.totalorder %s763_s5, %s757_s25 }
  0x43   : > { %v268_v54 = vsel %vm203_vm0, %v245_v47, 0.0  ;;  %v273_v56 = vadd.f32 %v272_v51, %v246_v49  ;;  %v250_v57 = vmul.f32 %v1025_v26, %v1025_v26  ;;  %v248_v60 = vmul.f32 %v1032_v29, %v1032_v29 }
  0x44   : > { %226 = vadd.xlane.f32.xlu1 %v225_v24  ;;  %v269_v58 = vadd.f32 %v268_v54, %v244_v52  ;;  %v280_v59 = vsel %vm203_vm0, %v251_v53, 0.0  ;;  %v276_v61 = vsel %vm203_vm0, %v249_v55, 0.0  ;;  %v828_v3 = vmov 0   ;;  %p766_p1 = por %p765_p13, %p764_p9 }
  0x45   : > { %222 = vadd.xlane.f32.xlu0 %v221_v25  ;;  %v281_v62 = vadd.f32 %v280_v59, %v250_v57  ;;  %v277_v63 = vadd.f32 %v276_v61, %v248_v60  ;;  %708 = vset.pattern.permute.xlu1 %v828_v3 }
  0x46   : > { %707 = vset.pattern.permute.xlu0 %v828_v3  ;;  %p767_p3 = pnand %p766_p1, %p760_p8 }
  0x48   : > { %234 = vadd.xlane.f32.xlu1 %v233_v32 }
  0x49   : > { %230 = vadd.xlane.f32.xlu0 %v229_v34 }
  0x4c   : > { %258 = vadd.xlane.f32.xlu1 %v257_v40 }
  0x4d   : > { %254 = vadd.xlane.f32.xlu0 %v253_v42 }
  0x50   : > { %266 = vadd.xlane.f32.xlu1 %v265_v48 }
  0x51   : > { %262 = vadd.xlane.f32.xlu0 %v261_v50 }
  0x54   : > { %274 = vadd.xlane.f32.xlu1 %v273_v56 }
  0x55   : > { %270 = vadd.xlane.f32.xlu0 %v269_v58 }
  0x58   : > { %282 = vadd.xlane.f32.xlu1 %v281_v62 }
  0x59   : > { %278 = vadd.xlane.f32.xlu0 %v277_v63 }
  0xc9   : > { %v215_v7 = vpop.xlane.xlu1 %214 }
  0xca   : > { %v207_v8 = vpop.xlane.xlu0 %206  ;;  %v1085_v32 = vmul.f32 0.0051020407, %v215_v7 }
  0xcb   : > { %v1078_v24 = vmul.f32 0.0051020407, %v207_v8 }
  0xcc   : > { %v302_v44 = vmul.f32 %v1085_v32, %v1085_v32 }
  0xcd   : > { %v219_v9 = vpop.xlane.xlu1 %218  ;;  %v300_v33 = vmul.f32 %v1078_v24, %v1078_v24 }
  0xce   : > { %v211_v12 = vpop.xlane.xlu0 %210  ;;  %v1081_v27 = vmul.f32 0.0051020407, %v219_v9 }
  0xcf   : > { %v1076_v19 = vmul.f32 0.0051020407, %v211_v12 }
  0xd0   : > { %v303_v40 = vmul.f32 %v1081_v27, %v1081_v27 }
  0xd1   : > { %v227_v13 = vpop.xlane.xlu1 %226  ;;  %v301_v28 = vmul.f32 %v1076_v19, %v1076_v19 }
  0xd2   : > { %v223_v16 = vpop.xlane.xlu0 %222  ;;  %v1093_v36 = vmul.f32 0.0051020407, %v227_v13 }
  0xd3   : > { %v1095_v37 = vmul.f32 0.0051020407, %v223_v16 }
  0xd4   : > { %v305_v49 = vmul.f32 %v1093_v36, %v1093_v36 }
  0xd5   : > { %v235_v17 = vpop.xlane.xlu1 %234  ;;  %v304_v50 = vmul.f32 %v1095_v37, %v1095_v37 }
  0xd6   : > { %v231_v21 = vpop.xlane.xlu0 %230  ;;  %v1109_v54 = vmul.f32 0.0051020407, %v235_v17 }
  0xd7   : > { %v1111_v58 = vmul.f32 0.0051020407, %v231_v21 }
  0xd8   : > { %v307_v8 = vmul.f32 %v1109_v54, %v1109_v54 }
  0xd9   : > { %v259_v25 = vpop.xlane.xlu1 %258  ;;  %v306_v16 = vmul.f32 %v1111_v58, %v1111_v58 }
  0xda   : > { %v293_v30 = vmul.f32 0.0051020407, %v259_v25  ;;  %v255_v31 = vpop.xlane.xlu0 %254 }
  0xdb   : > { %v292_v34 = vmul.f32 0.0051020407, %v255_v31 }
  0xdc   : > { %v309_v35 = vsub.f32 %v293_v30, %v301_v28 }
  0xdd   : > { %v308_v38 = vsub.f32 %v292_v34, %v300_v33  ;;  %v267_v39 = vpop.xlane.xlu1 %266  ;;  %v341_v34 = vld [vmem:[%s1121_s7 + $0x8] sm:$0xff] }
  0xde   : > { %v317_v41 = vmax.f32 %v309_v35, 0.0  ;;  %v295_v42 = vmul.f32 0.0051020407, %v267_v39  ;;  %v263_v43 = vpop.xlane.xlu0 %262 }
  0xdf   : > { %v316_v45 = vmax.f32 %v308_v38, 0.0  ;;  %v294_v46 = vmul.f32 0.0051020407, %v263_v43  ;;  %v340_v38 = vld [vmem:[%s1121_s7] sm:$0xff] }
  0xe0   : > { %v325_v47 = vadd.f32 0.001, %v317_v41  ;;  %v311_v48 = vsub.f32 %v295_v42, %v303_v40 }
  0xe1   : > { %v324_v51 = vadd.f32 0.001, %v316_v45  ;;  %v310_v52 = vsub.f32 %v294_v46, %v302_v44  ;;  %v275_v53 = vpop.xlane.xlu1 %274  ;;  %v342_v46 = vld [vmem:[%s1121_s7 + $0x10] sm:$0xff] }
  0xe2   : > { %711 = vrsqrt.f32 %v325_v47  ;;  %v319_v55 = vmax.f32 %v311_v48, 0.0  ;;  %v297_v56 = vmul.f32 0.0051020407, %v275_v53  ;;  %v271_v57 = vpop.xlane.xlu0 %270 }
  0xe3   : > { %713 = vrsqrt.f32 %v324_v51  ;;  %v318_v59 = vmax.f32 %v310_v52, 0.0  ;;  %v296_v60 = vmul.f32 0.0051020407, %v271_v57  ;;  %v344_v52 = vld [vmem:[%s1121_s7 + $0x20] sm:$0xff] }
  0xe4   : > { %v327_v61 = vadd.f32 0.001, %v319_v55  ;;  %v313_v62 = vsub.f32 %v297_v56, %v305_v49 }
  0xe5   : > { %v326_v63 = vadd.f32 0.001, %v318_v59  ;;  %v312_v3 = vsub.f32 %v296_v60, %v304_v50  ;;  %v283_v7 = vpop.xlane.xlu1 %282  ;;  %v343_v50 = vld [vmem:[%s1121_s7 + $0x18] sm:$0xff]  ;;  %v345_v59 = vld [vmem:[%s1121_s7 + $0x28] sm:$0xff]  ;;  %v346_v60 = vld [vmem:[%s1121_s7 + $0x30] sm:$0xff] }
  0xe6   : > { %715 = vrsqrt.f32 %v327_v61  ;;  %v321_v9 = vmax.f32 %v313_v62, 0.0  ;;  %v299_v12 = vmul.f32 0.0051020407, %v283_v7  ;;  %v279_v13 = vpop.xlane.xlu0 %278  ;;  %v347_v7 = vld [vmem:[%s1121_s7 + $0x38] sm:$0xff] }
  0xe7   : > { %717 = vrsqrt.f32 %v326_v63  ;;  %v320_v17 = vmax.f32 %v312_v3, 0.0  ;;  %v298_v21 = vmul.f32 0.0051020407, %v279_v13 }
  0xe8   : > { %v329_v25 = vadd.f32 0.001, %v321_v9  ;;  %v315_v28 = vsub.f32 %v299_v12, %v307_v8 }
  0xe9   : > { %v328_v30 = vadd.f32 0.001, %v320_v17  ;;  %v314_v31 = vsub.f32 %v298_v21, %v306_v16 }
  0xea   : > { %719 = vrsqrt.f32 %v329_v25  ;;  %v323_v33 = vmax.f32 %v315_v28, 0.0 }
  0xeb   : > { %721 = vrsqrt.f32 %v328_v30  ;;  %v322_v35 = vmax.f32 %v314_v31, 0.0 }
  0xec   : > { %v712_v39 = vpop.eup %711  ;;  %v331_v40 = vadd.f32 0.001, %v323_v33 }
  0xed   : > { %v714_v41 = vpop.eup %713  ;;  %v330_v42 = vadd.f32 0.001, %v322_v35  ;;  %v349_v43 = vmul.f32 %v712_v39, %v341_v34 }
  0xee   : > { %723 = vrsqrt.f32 %v331_v40  ;;  %v348_v44 = vmul.f32 %v714_v41, %v340_v38 }
  0xef   : > { %725 = vrsqrt.f32 %v330_v42  ;;  %v357_v45 = vmul.f32 %v349_v43, %v1076_v19 }
  0xf0   : > { %v716_v47 = vpop.eup %715  ;;  %v356_v48 = vmul.f32 %v348_v44, %v1078_v24 }
  0xf1   : > { %v718_v49 = vpop.eup %717  ;;  %374 = vrot.lane.b32.xlu1 %v357_v45, %s829_s8  ;;  %v351_v56 = vmul.f32 %v716_v47, %v343_v50 }
  0xf2   : > { %372 = vrot.lane.b32.xlu0 %v356_v48, %s829_s8  ;;  %v350_v51 = vmul.f32 %v718_v49, %v342_v46 }
  0xf3   : > { %v359_v24 = vmul.f32 %v351_v56, %v1081_v27  ;;  %v830_v27 = vmov 1  }
  0xf4   : > { %v720_v53 = vpop.eup %719  ;;  %v358_v55 = vmul.f32 %v350_v51, %v1085_v32 }
  0xf5   : > { %v722_v57 = vpop.eup %721  ;;  %v353_v63 = vmul.f32 %v720_v53, %v345_v59 }
  0xf6   : > { %376 = vrot.lane.b32.xlu1 %v358_v55, %s829_s8  ;;  %v352_v19 = vmul.f32 %v722_v57, %v344_v52 }
  0xf7   : > { %v361_v9 = vmul.f32 %v353_v63, %v1093_v36 }
  0xf8   : > { %v724_v61 = vpop.eup %723  ;;  %v360_v62 = vmul.f32 %v352_v19, %v1095_v37 }
  0xf9   : > { %v726_v3 = vpop.eup %725  ;;  %v355_v12 = vmul.f32 %v724_v61, %v347_v7 }
  0xfa   : > { %378 = vrot.lane.b32.xlu1 %v359_v24, %s829_s8  ;;  %380 = vrot.lane.b32.xlu0 %v360_v62, %s829_s8  ;;  %v354_v8 = vmul.f32 %v726_v3, %v346_v60 }
  0xfb   : > { %v363_v13 = vmul.f32 %v355_v12, %v1109_v54 }
  0xfc   : > { %v362_v32 = vmul.f32 %v354_v8, %v1111_v58 }
  0xfe   : > { %382 = vrot.lane.b32.xlu1 %v361_v9, %s829_s8  ;;  %384 = vrot.lane.b32.xlu0 %v362_v32, %s829_s8 }
 0x102   : > { %386 = vrot.lane.b32.xlu1 %v363_v13, %s829_s8  ;;  %406 = vperm.xlu0 %707, %v348_v44  }
 0x106   : > { %411 = vperm.xlu1 %708, %v349_v43   ;;  %421 = vperm.xlu0 %707, %v351_v56  }
 0x10a   : > { %416 = vperm.xlu1 %708, %v350_v51   ;;  %431 = vperm.xlu0 %707, %v353_v63  }
 0x10e   : > { %426 = vperm.xlu1 %708, %v352_v19   ;;  %441 = vperm.xlu0 %707, %v355_v12  }
 0x112   : > { %436 = vperm.xlu1 %708, %v354_v8   ;;  %710 = vset.pattern.permute.xlu0 %v830_v27 }
 0x116   : > { %709 = vset.pattern.permute.xlu1 %v830_v27 }
 0x163   : > { %v375_v36 = vpop.permute.xlu1 %374 }
 0x164   : > { %v397_v37 = vsub.f32 %v341_v34, %v375_v36  ;;  %v373_v58 = vpop.permute.xlu0 %372 }
 0x165   : > { %v396_v16 = vsub.f32 %v340_v38, %v373_v58 }
 0x166   : > { %467 = vperm.xlu0 %710, %v397_v37  }
 0x167   : > { %462 = vperm.xlu1 %709, %v396_v16  }
 0x168   : > { %v377_v17 = vpop.permute.xlu1 %376 }
 0x169   : > { %v398_v54 = vsub.f32 %v342_v46, %v377_v17 }
 0x16b   : > { %472 = vperm.xlu1 %709, %v398_v54  }
 0x16c   : > { %v379_v21 = vpop.permute.xlu1 %378  ;;  %v381_v25 = vpop.permute.xlu0 %380 }
 0x16d   : > { %v399_v28 = vsub.f32 %v343_v50, %v379_v21  ;;  %v400_v30 = vsub.f32 %v344_v52, %v381_v25 }
 0x16f   : > { %477 = vperm.xlu1 %709, %v399_v28   ;;  %482 = vperm.xlu0 %710, %v400_v30  }
 0x170   : > { %v383_v31 = vpop.permute.xlu1 %382  ;;  %v385_v33 = vpop.permute.xlu0 %384 }
 0x171   : > { %v401_v35 = vsub.f32 %v345_v59, %v383_v31  ;;  %v402_v39 = vsub.f32 %v346_v60, %v385_v33 }
 0x173   : > { %487 = vperm.xlu1 %709, %v401_v35   ;;  %492 = vperm.xlu0 %710, %v402_v39  }
 0x174   : > { %v387_v34 = vpop.permute.xlu1 %386 }
 0x175   : > { %v403_v40 = vsub.f32 %v347_v7, %v387_v34 }
 0x177   : > { %497 = vperm.xlu1 %709, %v403_v40  }
 0x181   : > { %v407_v38 = vpop.permute.xlu0 %406 }
 0x182   : > { %v444_v50 = vmul.f32 %v407_v38, %v971_v2  ;;  %v445_v51 = vmul.f32 %v407_v38, %v976_v4 }
 0x185   : > { %v412_v41 = vpop.permute.xlu1 %411  ;;  %v422_v42 = vpop.permute.xlu0 %421 }
 0x186   : > { %v446_v48 = vmul.f32 %v412_v41, %v990_v10  ;;  %v447_v49 = vmul.f32 %v412_v41, %v993_v11  ;;  %v450_v60 = vmul.f32 %v422_v42, %v979_v5  ;;  %v451_v61 = vmul.f32 %v422_v42, %v982_v6 }
 0x189   : > { %v417_v43 = vpop.permute.xlu1 %416  ;;  %v432_v44 = vpop.permute.xlu0 %431 }
 0x18a   : > { %v448_v2 = vmul.f32 %v417_v43, %v965_v0  ;;  %v449_v4 = vmul.f32 %v417_v43, %v968_v1  ;;  %v454_v6 = vmul.f32 %v432_v44, %v1007_v18  ;;  %v455_v8 = vmul.f32 %v432_v44, %v999_v14 }
 0x18d   : > { %v427_v45 = vpop.permute.xlu1 %426  ;;  %v442_v46 = vpop.permute.xlu0 %441 }
 0x18e   : > { %v452_v24 = vmul.f32 %v427_v45, %v1012_v20  ;;  %v453_v62 = vmul.f32 %v427_v45, %v1002_v15  ;;  %v459_v13 = vmul.f32 %v442_v46, %v1017_v22 }
 0x191   : > { %v437_v47 = vpop.permute.xlu1 %436 }
 0x192   : > { %v456_v20 = vmul.f32 %v437_v47, %v1032_v29  ;;  %v457_v15 = vmul.f32 %v437_v47, %v1020_v23  ;;  %v458_v23 = vmul.f32 %v442_v46, %v1025_v26 }
 0x1e5   : > { %v468_v52 = vpop.permute.xlu0 %467 }
 0x1e6   : > { %v463_v53 = vpop.permute.xlu1 %462  ;;  %v502_v55 = vadd.f32 %v468_v52, %v446_v48  ;;  %v503_v56 = vadd.f32 %v468_v52, %v447_v49 }
 0x1e7   : > { %v500_v57 = vadd.f32 %v463_v53, %v444_v50  ;;  %v501_v59 = vadd.f32 %v463_v53, %v445_v51 }
 0x1e8   : > { %518 = vst [vmem:[%s1145_s14 + $0x10] sm:$0xff] %v502_v55  ;;  %519 = vst.msk [vmem:[%s1145_s14 + $0x18] sm:$0xff] %vm203_vm0, %v503_v56 }
 0x1e9   : > { %516 = vst [vmem:[%s1145_s14] sm:$0xff] %v500_v57  ;;  %517 = vst.msk [vmem:[%s1145_s14 + $0x8] sm:$0xff] %vm203_vm0, %v501_v59 }
 0x1ea   : > { %v473_v10 = vpop.permute.xlu1 %472 }
 0x1eb   : > { %v504_v11 = vadd.f32 %v473_v10, %v448_v2  ;;  %v505_v19 = vadd.f32 %v473_v10, %v449_v4 }
 0x1ed   : > { %520 = vst [vmem:[%s1145_s14 + $0x20] sm:$0xff] %v504_v11  ;;  %521 = vst.msk [vmem:[%s1145_s14 + $0x28] sm:$0xff] %vm203_vm0, %v505_v19 }
 0x1ee   : > { %v478_v0 = vpop.permute.xlu1 %477  ;;  %v483_v1 = vpop.permute.xlu0 %482 }
 0x1ef   : > { %v506_v63 = vadd.f32 %v478_v0, %v450_v60  ;;  %v507_v3 = vadd.f32 %v478_v0, %v451_v61  ;;  %v508_v7 = vadd.f32 %v483_v1, %v452_v24  ;;  %v509_v5 = vadd.f32 %v483_v1, %v453_v62 }
 0x1f1   : > { %522 = vst [vmem:[%s1145_s14 + $0x30] sm:$0xff] %v506_v63  ;;  %523 = vst.msk [vmem:[%s1145_s14 + $0x38] sm:$0xff] %vm203_vm0, %v507_v3 }
 0x1f2   : > { %524 = vst [vmem:[%s1145_s14 + $0x40] sm:$0xff] %v508_v7  ;;  %525 = vst.msk [vmem:[%s1145_s14 + $0x48] sm:$0xff] %vm203_vm0, %v509_v5  ;;  %v488_v9 = vpop.permute.xlu1 %487  ;;  %v493_v32 = vpop.permute.xlu0 %492 }
 0x1f3   : > { %v510_v12 = vadd.f32 %v488_v9, %v454_v6  ;;  %v511_v18 = vadd.f32 %v488_v9, %v455_v8  ;;  %v512_v14 = vadd.f32 %v493_v32, %v456_v20  ;;  %v513_v29 = vadd.f32 %v493_v32, %v457_v15 }
 0x1f5   : > { %526 = vst [vmem:[%s1145_s14 + $0x50] sm:$0xff] %v510_v12  ;;  %527 = vst.msk [vmem:[%s1145_s14 + $0x58] sm:$0xff] %vm203_vm0, %v511_v18 }
 0x1f6   : > { %528 = vst [vmem:[%s1145_s14 + $0x60] sm:$0xff] %v512_v14  ;;  %529 = vst.msk [vmem:[%s1145_s14 + $0x68] sm:$0xff] %vm203_vm0, %v513_v29  ;;  %v498_v27 = vpop.permute.xlu1 %497 }
 0x1f7   : > { %v514_v26 = vadd.f32 %v498_v27, %v458_v23  ;;  %v515_v36 = vadd.f32 %v498_v27, %v459_v13 }
 0x1f9   : > { %530 = vst [vmem:[%s1145_s14 + $0x70] sm:$0xff] %v514_v26  ;;  %531 = vst.msk [vmem:[%s1145_s14 + $0x78] sm:$0xff] %vm203_vm0, %v515_v36 }
 0x1fa   : > { %770 = shalt.err (!%p767_p3)
}
 0x1fb   : > { %s771_s6 = scalar_lea.hbm %s1185_s24, 2048  ;;  %s775_s30 = scalar_lea.hbm %s1235_s2, 6144 }
 0x1fc   : > { %p772_p4 = scmp.ne.s32.totalorder %s1185_s24, %s771_s6  ;;  %p776_p2 = scmp.lt.u32.totalorder %s1185_s24, %s1235_s2 }
 0x1fd   : > { %p777_p7 = scmp.lt.u32.totalorder %s775_s30, %s771_s6  ;;  %p779_p10 = scmp.lt.u32.totalorder %s771_s6, %s1185_s24 }
 0x1fe   : > { %p773_p5 = pnand %p772_p4, %p1243_p11 }
 0x1ff   : > { %p778_p6 = por %p777_p7, %p776_p2 }
 0x200   : > { %p774_p0 = pneg %p773_p5 }
 0x201   : > { %p780_p12 = por %p779_p10, %p778_p6 }
 0x203   : > { %p781_p8 = pnand %p780_p12, %p774_p0 }
 0x205   : > { %784 = shalt.err (!%p781_p8)
}
 0x206   : > { %s832_s7 = smov 256   ;;  %s833_s8 = smov 16  }
 0x207   : > { %656 = dma.vmem_to_hbm [thread:$0]  (%p1243_p11), %s1187_s17, 2048, %s1185_s24, %s533_s13, %s832_s7, %s832_s7, %s833_s8  }
 0x208 PF: > { %p667_p9 = scmp.ge.s32.totalorder %s823_s12, 2  ;;  %s562_s14 = sand.u32 1, %s811_s9  }
 0x209   : > { %p1244_p13 = scmp.ne.s32.totalorder %s1240_s22, 0  ;;  %s563_s16 = scalar_lea.sflag [#allocation4], %s562_s14 }
 0x20b   : > { %p663_p1 = pnand %p667_p9, %p1244_p13 }
 0x20d   : > { %806 = dma.done.wait (!%p663_p1), %s563_s16, 2048  }
 0x20e   : > { %808 = vsyncadd (!%p663_p1), %s563_s16, 4294965248  ;;  %p15_p3 = scmp.ge.s32.totalorder %s874_s15, 5   ;;  %s1245_s9 = smov %s815_s10 }
 0x20f   : > { %s1246_s10 = smov %s819_s11  ;;  %s1247_s11 = smov %s886_s18 }
 0x210   : > { %s1248_s12 = smov %s874_s15  ;;  %17 = sbr.rel (!%p15_p3) target bundleno = 5 (0x5), region = 76 }
 0x217   :  { %568 = vsyncpa [#allocation3], 1 }
 0x218   :  { %570 = vsyncpa [#allocation3 + $0x1], 1 }
 0x219   :  { %571 = vsyncpa [#allocation4], 1 }
 0x21a   :  { %573 = vsyncpa [#allocation4 + $0x1], 1 }

</bundles_post_ra>
